<compile_context>
chip_gen: v7x
topology: tpu7x:2x2x1
jax: 0.10.0
libtpu: 0.0.40
codegen_flags: <defaults>
</compile_context>

<pallas_src>
import functools

import jax
import jax.numpy as jnp
import numpy as np
from jax import lax
from jax.experimental import pallas as pl
from jax.experimental.pallas import tpu as pltpu


def _round_up(a, b):
    return (a + b - 1) // b * b


def _round_down(a, b):
    return (a // b) * b


# ----------------------------- Pallas kernel ------------------------------ #
def _adapter_mask_kernel(x_ref,   # VMEM (TM, D_pad)      streamed row tile
                         w1_ref,  # VMEM (D_pad, H_pad)   diag(ln_w)·W1·diag(g1), zero-padded
                         b1_ref,  # VMEM (1, H_pad)       ln_b@ (W1·g1) + b1·g1  (f32)
                         w2_ref,  # VMEM (H_pad, D_pad)   W2·diag(g2), zero-padded
                         b2_ref,  # VMEM (1, D_pad)       b2·g2                  (f32)
                         o_ref,   # VMEM (TM, D_pad)
                         *,
                         eps,
                         d_valid):
    xf = x_ref[...].astype(jnp.float32)
    d_pad = xf.shape[-1]

    # LayerNorm statistics over the *real* hidden dim (biased variance, torch).
    if d_valid == d_pad:
        mu = jnp.mean(xf, axis=-1, keepdims=True)
        xc = xf - mu
        var = jnp.mean(xc * xc, axis=-1, keepdims=True)
    else:
        # Padded lanes of x are exactly zero -> one-pass moments, no lane mask.
        inv_d = 1.0 / float(d_valid)
        mu = jnp.sum(xf, axis=-1, keepdims=True) * inv_d
        ex2 = jnp.sum(xf * xf, axis=-1, keepdims=True) * inv_d
        var = jnp.maximum(ex2 - mu * mu, 0.0)
        xc = xf - mu
    xn = xc * lax.rsqrt(var + eps)          # rsqrt -> EUP slot (free-ish)
    # Padded lanes of xn are nonzero (-mu*rsqrt) but hit zero-padded W1 rows.

    # fc1 (LN affine + gate pre-folded) + ReLU
    w1 = w1_ref[...]
    h = jnp.dot(xn.astype(w1.dtype), w1, preferred_element_type=jnp.float32)
    h = jnp.maximum(h + b1_ref[...], 0.0)

    # fc2 (gate pre-folded)
    w2 = w2_ref[...]
    h = jnp.dot(h.astype(w2.dtype), w2, preferred_element_type=jnp.float32)
    h = h + b2_ref[...]

    # residual
    o_ref[...] = (xf + h).astype(o_ref.dtype)


# ------------------------- weight preparation ----------------------------- #
def prepare_adapter_weights(params, task_id, s, *, gates=None,
                            weight_dtype=None, eps=1e-5):
    """Fold sigmoid gates + LayerNorm affine into fc weights, pad to lane-dense
    shapes, optionally cast resident weights to bf16.  Do this once per
    (adapter, task, s) and reuse."""
    f32 = jnp.float32
    if gates is None:
        g1 = jax.nn.sigmoid(jnp.asarray(s, f32) * params["efc1"][task_id].astype(f32))
        g2 = jax.nn.sigmoid(jnp.asarray(s, f32) * params["efc2"][task_id].astype(f32))
    else:
        g1 = jnp.reshape(gates[0], (-1,)).astype(f32)
        g2 = jnp.reshape(gates[1], (-1,)).astype(f32)

    lnw = params["ln_w"].astype(f32)
    lnb = params["ln_b"].astype(f32)
    # gate fold (valid: sigmoid > 0 -> relu(z)*g == relu(z*g) elementwise)
    w1g = params["w1"].astype(f32) * g1[None, :]          # (D, H)
    b1g = params["b1"].astype(f32) * g1                   # (H,)
    # LayerNorm affine fold
    w1f = lnw[:, None] * w1g                              # diag(ln_w)·W1·diag(g1)
    b1f = lnb @ w1g + b1g
    w2f = params["w2"].astype(f32) * g2[None, :]          # (H, D)
    b2f = params["b2"].astype(f32) * g2                   # (D,)

    D, H = w1f.shape
    D_pad = _round_up(D, 128)
    H_pad = _round_up(H, 128)

    if weight_dtype is not None:                          # e.g. jnp.bfloat16
        w1f = w1f.astype(weight_dtype)
        w2f = w2f.astype(weight_dtype)

    def pad_mat(w, r, c):
        if w.shape == (r, c):
            return w
        return jnp.zeros((r, c), w.dtype).at[:w.shape[0], :w.shape[1]].set(w)

    def pad_row(v, n):
        return jnp.zeros((1, n), v.dtype).at[0, : v.shape[0]].set(v)

    return dict(
        w1=pad_mat(w1f, D_pad, H_pad), b1=pad_row(b1f, H_pad),
        w2=pad_mat(w2f, H_pad, D_pad), b2=pad_row(b2f, D_pad),
        d=int(D), h=int(H), d_pad=int(D_pad), h_pad=int(H_pad), eps=float(eps),
    )


# ------------------------------ host wrapper ------------------------------ #
def adapter_mask_forward_prepared(x, prep):
    orig_shape = x.shape
    D, D_pad, H_pad = prep["d"], prep["d_pad"], prep["h_pad"]
    assert orig_shape[-1] == D
    M = int(np.prod(orig_shape[:-1]))
    x_itemsize = jnp.dtype(x.dtype).itemsize

    x2d = x.reshape(M, D)
    needs_d_pad = (D != D_pad)
    if needs_d_pad:
        # Only pay the pad copy when D is not lane-aligned (small-model case).
        x2d = jnp.zeros((M, D_pad), x.dtype).at[:, :D].set(x2d)

    # --- VMEM budgeting (single-buffered weights + double-buffered act tiles) ---
    try:
        phys = int(getattr(pltpu.get_tpu_info(), "vmem_capacity_bytes"))
    except Exception:  # noqa: BLE001 - conservative fallback (v7x per-TC size)
        phys = 64 << 20
    vmem_limit = int(min(int(phys * 0.7), 96 << 20))
    wsize = jnp.dtype(prep["w1"].dtype).itemsize
    weight_bytes = 2 * D_pad * H_pad * wsize + 16 * (D_pad + H_pad) * 4
    tile_budget = min(int(phys * 0.5), 64 << 20) - weight_bytes - (2 << 20)
    tile_budget = max(tile_budget, 2 << 20)

    align = 16 if x_itemsize < 4 else 8          # bf16 sublane packing unit
    per_row = (2 * 2 * D_pad * x_itemsize        # in + out tiles, double-buffered
               + (3 * D_pad + 2 * H_pad) * 4)    # f32 intermediates (xf/xn/h/h2)
    tm = min(2048, _round_up(M, align))
    if tm >= 256:
        tm = _round_down(tm, 256)                # MXU-friendly M dimension
    while tm > align and tm * per_row > tile_budget:
        tm = max(align, _round_up(tm // 2, align))
        if tm >= 256:
            tm = _round_down(tm, 256)

    grid = (pl.cdiv(M, tm),)                     # partial last block, no M padding
    row_spec = pl.BlockSpec((tm, D_pad), lambda i: (i, 0))

    def const_specs(single_buffered):
        kw = {"pipeline_mode": pl.Buffered(1)} if single_buffered else {}

        def cs(shape):
            return pl.BlockSpec(shape, lambda i: (0, 0), **kw)

        return [cs((D_pad, H_pad)), cs((1, H_pad)),
                cs((H_pad, D_pad)), cs((1, D_pad))]

    kernel = functools.partial(_adapter_mask_kernel, eps=prep["eps"], d_valid=D)
    cost = pl.CostEstimate(
        flops=int(4 * M * D_pad * H_pad + 10 * M * D_pad),
        transcendentals=int(M),
        bytes_accessed=int(2 * M * D_pad * x_itemsize + 2 * D_pad * H_pad * wsize),
    )

    def run(single_buffered):
        return pl.pallas_call(
            kernel,
            out_shape=jax.ShapeDtypeStruct((M, D_pad), x.dtype),
            grid=grid,
            in_specs=[row_spec] + const_specs(single_buffered),
            out_specs=row_spec,
            compiler_params=pltpu.CompilerParams(
                dimension_semantics=("parallel",),   # v7x: shard row tiles over both TCs
                vmem_limit_bytes=vmem_limit),
            cost_estimate=cost,
        )(x2d, prep["w1"], prep["b1"], prep["w2"], prep["b2"])

    try:
        out2d = run(True)
    except Exception:  # noqa: BLE001 - Buffered(1) unsupported on this jax: fall back
        out2d = run(False)

    if needs_d_pad:
        out2d = out2d[:, :D]
    return out2d.reshape(orig_shape)


def adapter_mask_forward(x, params, task_id, s, *, eps=1e-5, weight_dtype=None):
    """One-shot AdapterMask forward (folds weights every call).  Prefer
    MixAdapterMaskPallas, which caches the folded weights."""
    prep = prepare_adapter_weights(params, task_id, s,
                                   weight_dtype=weight_dtype, eps=eps)
    return adapter_mask_forward_prepared(x, prep)


# ---------------------------- MixAdapterMask ------------------------------ #
def calculate_task_adapter_id(t, tasks_per_adapter):
    # TODO(synk): replace with the project's real task->adapter mapping.
    return t // tasks_per_adapter, t % tasks_per_adapter


class MixAdapterMaskPallas:
    """MixAdapterMask.forward on TPU.  Caches folded/padded (optionally bf16)
    weights per (adapter_id, task_id, s, weight_dtype) so repeated calls pay
    the O(D*H) wrapper work once."""

    def __init__(self, all_params, tasks_per_adapter, *, eps=1e-5, weight_dtype=None):
        self.all_params = all_params
        self.tasks_per_adapter = tasks_per_adapter
        self.eps = eps
        self.weight_dtype = weight_dtype     # pass jnp.bfloat16 on v6e/v7x for the fast MXU path
        self._cache = {}

    def _prepared(self, adapter_id, task_id, s):
        key = (adapter_id, task_id, float(s),
               None if self.weight_dtype is None else jnp.dtype(self.weight_dtype).name)
        prep = self._cache.get(key)
        if prep is None:
            prep = prepare_adapter_weights(self.all_params[adapter_id], task_id, s,
                                           weight_dtype=self.weight_dtype, eps=self.eps)
            self._cache[key] = prep
        return prep

    def __call__(self, x, t=-1, s=None, mask_layer_pre=None):
        if t == -1:
            return x
        if isinstance(t, list):
            # TODO(synk): per-sample task ids (list t) use t[0]'s gates for the whole batch.
            adapter_id, task_id = calculate_task_adapter_id(t[0], self.tasks_per_adapter)
        else:
            adapter_id, task_id = calculate_task_adapter_id(t, self.tasks_per_adapter)
        params = self.all_params[adapter_id]

        if mask_layer_pre is not None:
            f32 = jnp.float32
            gp1 = jnp.reshape(mask_layer_pre[0], (-1,)).astype(f32)
            gp2 = jnp.reshape(mask_layer_pre[1], (-1,)).astype(f32)
            if s is not None:
                gc1 = jax.nn.sigmoid(jnp.asarray(s, f32) * params["efc1"][task_id].astype(f32))
                gc2 = jax.nn.sigmoid(jnp.asarray(s, f32) * params["efc2"][task_id].astype(f32))
                g1, g2 = jnp.maximum(gp1, gc1), jnp.maximum(gp2, gc2)
            else:
                g1, g2 = gp1, gp2
            prep = prepare_adapter_weights(params, task_id, s, gates=(g1, g2),
                                           weight_dtype=self.weight_dtype, eps=self.eps)
        else:
            prep = self._prepared(adapter_id, task_id, s)
        return adapter_mask_forward_prepared(x, prep)


# ------------------------------- reference -------------------------------- #
def _reference(x, p, task_id, s, mask_layer_pre=None):
    eps = 1e-5
    mu = jnp.mean(x, axis=-1, keepdims=True)
    var = jnp.mean((x - mu) ** 2, axis=-1, keepdims=True)
    xn = (x - mu) / jnp.sqrt(var + eps) * p["ln_w"] + p["ln_b"]
    h = jnp.maximum(xn @ p["w1"] + p["b1"], 0.0)
    g1 = jax.nn.sigmoid(s * p["efc1"][task_id])
    g2 = jax.nn.sigmoid(s * p["efc2"][task_id])
    if mask_layer_pre is not None:
        g1 = jnp.maximum(mask_layer_pre[0].reshape(-1), g1)
        g2 = jnp.maximum(mask_layer_pre[1].reshape(-1), g2)
    h = h * g1
    h = (h @ p["w2"] + p["b2"]) * g2
    return x + h


# --------------------------------- main ------------------------------------ #
if __name__ == "__main__":
    key = jax.random.PRNGKey(0)

    def init_adapter(k, n_embd, bottleneck, tasks_per_adapter):
        ks = jax.random.split(k, 6)
        return {
            "ln_w": jnp.ones((n_embd,), jnp.float32),
            "ln_b": jnp.zeros((n_embd,), jnp.float32),
            "w1": jax.random.normal(ks[0], (n_embd, bottleneck), jnp.float32) * 0.05,
            "b1": jax.random.normal(ks[1], (bottleneck,), jnp.float32) * 0.01,
            "w2": jax.random.normal(ks[2], (bottleneck, n_embd), jnp.float32) * 0.05,
            "b2": jax.random.normal(ks[3], (n_embd,), jnp.float32) * 0.01,
            "efc1": jax.random.normal(ks[4], (tasks_per_adapter, bottleneck), jnp.float32),
            "efc2": jax.random.normal(ks[5], (tasks_per_adapter, n_embd), jnp.float32),
        }

    # ---- config A: n_embd=32, bottleneck=16 (lane-UNaligned D path) ----
    n_embd, bottleneck = 32, 16
    adapter_num, tasks_per_adapter = 2, 3
    B, T = 2, 8
    key, kx, ka0, ka1 = jax.random.split(key, 4)
    all_params = [init_adapter(ka0, n_embd, bottleneck, tasks_per_adapter),
                  init_adapter(ka1, n_embd, bottleneck, tasks_per_adapter)]
    x = jax.random.normal(kx, (B, T, n_embd), jnp.float32)

    t, s = 4, 400.0                               # adapter_id=1, task_id=1
    adapter_id, task_id = calculate_task_adapter_id(t, tasks_per_adapter)
    mix = MixAdapterMaskPallas(all_params, tasks_per_adapter)

    # 1) small shape, single row tile
    out = jax.block_until_ready(mix(x, t, s))
    ref = _reference(x, all_params[adapter_id], task_id, s)
    np.testing.assert_allclose(np.asarray(out), np.asarray(ref), rtol=1e-4, atol=1e-5)

    # 2) larger shape -> multi-step pipelined grid with a partial last row block
    x_big = jax.random.normal(jax.random.PRNGKey(1), (4, 260, n_embd), jnp.float32)
    out_big = jax.block_until_ready(mix(x_big, t, s))
    ref_big = _reference(x_big, all_params[adapter_id], task_id, s)
    np.testing.assert_allclose(np.asarray(out_big), np.asarray(ref_big),
                               rtol=1e-4, atol=1e-5)

    # 3) lane-aligned D (zero wrapper copies) + partial last block
    n_embd2, bottleneck2 = 256, 48
    key, kx2, ka2 = jax.random.split(key, 3)
    params2 = [init_adapter(ka2, n_embd2, bottleneck2, tasks_per_adapter)]
    x2 = jax.random.normal(kx2, (4, 530, n_embd2), jnp.float32)
    mix2 = MixAdapterMaskPallas(params2, tasks_per_adapter)
    out2 = jax.block_until_ready(mix2(x2, 1, s))          # adapter 0, task 1
    ref2 = _reference(x2, params2[0], 1, s)
    np.testing.assert_allclose(np.asarray(out2), np.asarray(ref2),
                               rtol=1e-4, atol=1e-5)

    # 4) bf16-resident-weights path (halves weight VMEM/DMA, native MXU bf16)
    out_bf16 = jax.block_until_ready(
        adapter_mask_forward(x, all_params[adapter_id], task_id, s,
                             weight_dtype=jnp.bfloat16))
    np.testing.assert_allclose(np.asarray(out_bf16), np.asarray(ref),
                               rtol=5e-2, atol=5e-2)

    # 5) mask_layer_pre branch (max-combined gates)
    pre1 = jax.nn.sigmoid(jax.random.normal(jax.random.PRNGKey(7), (1, 1, bottleneck)))
    pre2 = jax.nn.sigmoid(jax.random.normal(jax.random.PRNGKey(8), (1, 1, n_embd)))
    out_pre = jax.block_until_ready(mix(x, t, s, mask_layer_pre=(pre1, pre2)))
    ref_pre = _reference(x, all_params[adapter_id], task_id, s, mask_layer_pre=(pre1, pre2))
    np.testing.assert_allclose(np.asarray(out_pre), np.asarray(ref_pre),
                               rtol=1e-4, atol=1e-5)

    # 6) t == -1 path: identity
    out_id = mix(x, -1, s)
    np.testing.assert_allclose(np.asarray(out_id), np.asarray(x))

    print("KERNEL_OK")
</pallas_src>

<mosaic_0001>
module attributes {stable_mosaic.version = 11 : i64} {
  func.func @_adapter_mask_kernel(%arg0: i32, %arg1: memref<16x128xf32, #tpu.memory_space<vmem>>, %arg2: memref<128x128xf32, #tpu.memory_space<vmem>>, %arg3: memref<1x128xf32, #tpu.memory_space<vmem>>, %arg4: memref<128x128xf32, #tpu.memory_space<vmem>>, %arg5: memref<1x128xf32, #tpu.memory_space<vmem>>, %arg6: memref<16x128xf32, #tpu.memory_space<vmem>>) attributes {dimension_semantics = [#tpu.dimension_semantics<parallel>], iteration_bounds = array<i64: 1>, scalar_prefetch = 0 : i64, scratch_operands = 0 : i64, tpu.core_type = #tpu.core_type<tc>, window_params = [{transform_indices = @transform_0, window_bounds = array<i64: 16, 128>}, {pipeline_mode = #tpu.pipeline_mode<synchronous>, transform_indices = @transform_1, window_bounds = array<i64: 128, 128>}, {pipeline_mode = #tpu.pipeline_mode<synchronous>, transform_indices = @transform_2, window_bounds = array<i64: 1, 128>}, {pipeline_mode = #tpu.pipeline_mode<synchronous>, transform_indices = @transform_3, window_bounds = array<i64: 128, 128>}, {pipeline_mode = #tpu.pipeline_mode<synchronous>, transform_indices = @transform_4, window_bounds = array<i64: 1, 128>}, {transform_indices = @transform_5, window_bounds = array<i64: 16, 128>}]} {
    %c0 = arith.constant 0 : index
    %c0_0 = arith.constant 0 : index
    %0 = vector.load %arg1[%c0, %c0_0] : memref<16x128xf32, #tpu.memory_space<vmem>>, vector<16x128xf32>
    %cst = arith.constant dense<0.000000e+00> : vector<16xf32>
    %1 = vector.multi_reduction <add>, %0, %cst [1] : vector<16x128xf32> to vector<16xf32>
    %2 = vector.shape_cast %1 : vector<16xf32> to vector<16x1xf32>
    %cst_1 = arith.constant 3.125000e-02 : f32
    %3 = vector.broadcast %cst_1 : f32 to vector<16x1xf32>
    %4 = arith.mulf %2, %3 : vector<16x1xf32>
    %5 = arith.mulf %0, %0 : vector<16x128xf32>
    %cst_2 = arith.constant dense<0.000000e+00> : vector<16xf32>
    %6 = vector.multi_reduction <add>, %5, %cst_2 [1] : vector<16x128xf32> to vector<16xf32>
    %7 = vector.shape_cast %6 : vector<16xf32> to vector<16x1xf32>
    %cst_3 = arith.constant 3.125000e-02 : f32
    %8 = vector.broadcast %cst_3 : f32 to vector<16x1xf32>
    %9 = arith.mulf %7, %8 : vector<16x1xf32>
    %10 = arith.mulf %4, %4 : vector<16x1xf32>
    %11 = arith.subf %9, %10 : vector<16x1xf32>
    %cst_4 = arith.constant 0.000000e+00 : f32
    %12 = vector.broadcast %cst_4 : f32 to vector<16x1xf32>
    %13 = arith.maximumf %11, %12 : vector<16x1xf32>
    %14 = vector.broadcast %4 : vector<16x1xf32> to vector<16x128xf32>
    %15 = arith.subf %0, %14 : vector<16x128xf32>
    %cst_5 = arith.constant 9.99999974E-6 : f32
    %16 = vector.broadcast %cst_5 : f32 to vector<16x1xf32>
    %17 = arith.addf %13, %16 : vector<16x1xf32>
    %18 = math.rsqrt %17 : vector<16x1xf32>
    %19 = vector.broadcast %18 : vector<16x1xf32> to vector<16x128xf32>
    %20 = arith.mulf %15, %19 : vector<16x128xf32>
    %c0_6 = arith.constant 0 : index
    %c0_7 = arith.constant 0 : index
    %21 = vector.load %arg2[%c0_6, %c0_7] : memref<128x128xf32, #tpu.memory_space<vmem>>, vector<128x128xf32>
    %cst_8 = arith.constant dense<0.000000e+00> : vector<16x128xf32>
    %22 = tpu.matmul %20, %21, %cst_8 {dimension_numbers = #tpu.dot_dimension_numbers<[1], [0], [0], [1], [0, 0, 1, 1], [], []>} : vector<16x128xf32>, vector<128x128xf32>, vector<16x128xf32> -> vector<16x128xf32>
    %c0_9 = arith.constant 0 : index
    %c0_10 = arith.constant 0 : index
    %23 = vector.load %arg3[%c0_9, %c0_10] : memref<1x128xf32, #tpu.memory_space<vmem>>, vector<1x128xf32>
    %24 = vector.broadcast %23 : vector<1x128xf32> to vector<16x128xf32>
    %25 = arith.addf %22, %24 : vector<16x128xf32>
    %cst_11 = arith.constant 0.000000e+00 : f32
    %26 = vector.broadcast %cst_11 : f32 to vector<16x128xf32>
    %27 = arith.maximumf %25, %26 : vector<16x128xf32>
    %c0_12 = arith.constant 0 : index
    %c0_13 = arith.constant 0 : index
    %28 = vector.load %arg4[%c0_12, %c0_13] : memref<128x128xf32, #tpu.memory_space<vmem>>, vector<128x128xf32>
    %cst_14 = arith.constant dense<0.000000e+00> : vector<16x128xf32>
    %29 = tpu.matmul %27, %28, %cst_14 {dimension_numbers = #tpu.dot_dimension_numbers<[1], [0], [0], [1], [0, 0, 1, 1], [], []>} : vector<16x128xf32>, vector<128x128xf32>, vector<16x128xf32> -> vector<16x128xf32>
    %c0_15 = arith.constant 0 : index
    %c0_16 = arith.constant 0 : index
    %30 = vector.load %arg5[%c0_15, %c0_16] : memref<1x128xf32, #tpu.memory_space<vmem>>, vector<1x128xf32>
    %31 = vector.broadcast %30 : vector<1x128xf32> to vector<16x128xf32>
    %32 = arith.addf %29, %31 : vector<16x128xf32>
    %33 = arith.addf %0, %32 : vector<16x128xf32>
    %c0_17 = arith.constant 0 : index
    %c0_18 = arith.constant 0 : index
    %34 = vector.load %arg6[%c0_17, %c0_18] : memref<16x128xf32, #tpu.memory_space<vmem>>, vector<16x128xf32>
    tpu.vector_store %arg6[%c0_17, %c0_18], %33 {strides = array<i32>} : memref<16x128xf32, #tpu.memory_space<vmem>>, vector<16x128xf32>,
    return
  }
  func.func @transform_0(%arg0: i32) -> (i32, i32) {
    %c0_i32 = arith.constant 0 : i32
    %c0_i32_0 = arith.constant 0 : i32
    return %arg0, %c0_i32 : i32, i32
  }
  func.func @transform_1(%arg0: i32) -> (i32, i32) {
    %c0_i32 = arith.constant 0 : i32
    %c0_i32_0 = arith.constant 0 : i32
    %c0_i32_1 = arith.constant 0 : i32
    return %c0_i32, %c0_i32_0 : i32, i32
  }
  func.func @transform_2(%arg0: i32) -> (i32, i32) {
    %c0_i32 = arith.constant 0 : i32
    %c0_i32_0 = arith.constant 0 : i32
    %c0_i32_1 = arith.constant 0 : i32
    return %c0_i32, %c0_i32_0 : i32, i32
  }
  func.func @transform_3(%arg0: i32) -> (i32, i32) {
    %c0_i32 = arith.constant 0 : i32
    %c0_i32_0 = arith.constant 0 : i32
    %c0_i32_1 = arith.constant 0 : i32
    return %c0_i32, %c0_i32_0 : i32, i32
  }
  func.func @transform_4(%arg0: i32) -> (i32, i32) {
    %c0_i32 = arith.constant 0 : i32
    %c0_i32_0 = arith.constant 0 : i32
    %c0_i32_1 = arith.constant 0 : i32
    return %c0_i32, %c0_i32_0 : i32, i32
  }
  func.func @transform_5(%arg0: i32) -> (i32, i32) {
    %c0_i32 = arith.constant 0 : i32
    %c0_i32_0 = arith.constant 0 : i32
    return %arg0, %c0_i32 : i32, i32
  }
}

module attributes {stable_mosaic.version = 11 : i64} {
  func.func @_adapter_mask_kernel(%arg0: i32, %arg1: memref<16x128xf32, #tpu.memory_space<vmem>>, %arg2: memref<128x128xf32, #tpu.memory_space<vmem>>, %arg3: memref<1x128xf32, #tpu.memory_space<vmem>>, %arg4: memref<128x128xf32, #tpu.memory_space<vmem>>, %arg5: memref<1x128xf32, #tpu.memory_space<vmem>>, %arg6: memref<16x128xf32, #tpu.memory_space<vmem>>) attributes {dimension_semantics = [#tpu.dimension_semantics<parallel>], iteration_bounds = array<i64: 1>, scalar_prefetch = 0 : i64, scratch_operands = 0 : i64, tpu.core_type = #tpu.core_type<tc>, window_params = [{transform_indices = @transform_0, window_bounds = array<i64: 16, 128>}, {pipeline_mode = #tpu.pipeline_mode<synchronous>, transform_indices = @transform_1, window_bounds = array<i64: 128, 128>}, {pipeline_mode = #tpu.pipeline_mode<synchronous>, transform_indices = @transform_2, window_bounds = array<i64: 1, 128>}, {pipeline_mode = #tpu.pipeline_mode<synchronous>, transform_indices = @transform_3, window_bounds = array<i64: 128, 128>}, {pipeline_mode = #tpu.pipeline_mode<synchronous>, transform_indices = @transform_4, window_bounds = array<i64: 1, 128>}, {transform_indices = @transform_5, window_bounds = array<i64: 16, 128>}]} {
    %c0 = arith.constant 0 : index
    %c0_0 = arith.constant 0 : index
    %0 = vector.load %arg1[%c0, %c0_0] : memref<16x128xf32, #tpu.memory_space<vmem>>, vector<16x128xf32>
    %cst = arith.constant dense<0.000000e+00> : vector<16xf32>
    %1 = vector.multi_reduction <add>, %0, %cst [1] : vector<16x128xf32> to vector<16xf32>
    %2 = vector.shape_cast %1 : vector<16xf32> to vector<16x1xf32>
    %cst_1 = arith.constant 3.125000e-02 : f32
    %3 = vector.broadcast %cst_1 : f32 to vector<16x1xf32>
    %4 = arith.mulf %2, %3 : vector<16x1xf32>
    %5 = arith.mulf %0, %0 : vector<16x128xf32>
    %cst_2 = arith.constant dense<0.000000e+00> : vector<16xf32>
    %6 = vector.multi_reduction <add>, %5, %cst_2 [1] : vector<16x128xf32> to vector<16xf32>
    %7 = vector.shape_cast %6 : vector<16xf32> to vector<16x1xf32>
    %cst_3 = arith.constant 3.125000e-02 : f32
    %8 = vector.broadcast %cst_3 : f32 to vector<16x1xf32>
    %9 = arith.mulf %7, %8 : vector<16x1xf32>
    %10 = arith.mulf %4, %4 : vector<16x1xf32>
    %11 = arith.subf %9, %10 : vector<16x1xf32>
    %cst_4 = arith.constant 0.000000e+00 : f32
    %12 = vector.broadcast %cst_4 : f32 to vector<16x1xf32>
    %13 = arith.maximumf %11, %12 : vector<16x1xf32>
    %14 = vector.broadcast %4 : vector<16x1xf32> to vector<16x128xf32>
    %15 = arith.subf %0, %14 : vector<16x128xf32>
    %cst_5 = arith.constant 9.99999974E-6 : f32
    %16 = vector.broadcast %cst_5 : f32 to vector<16x1xf32>
    %17 = arith.addf %13, %16 : vector<16x1xf32>
    %18 = math.rsqrt %17 : vector<16x1xf32>
    %19 = vector.broadcast %18 : vector<16x1xf32> to vector<16x128xf32>
    %20 = arith.mulf %15, %19 : vector<16x128xf32>
    %c0_6 = arith.constant 0 : index
    %c0_7 = arith.constant 0 : index
    %21 = vector.load %arg2[%c0_6, %c0_7] : memref<128x128xf32, #tpu.memory_space<vmem>>, vector<128x128xf32>
    %cst_8 = arith.constant dense<0.000000e+00> : vector<16x128xf32>
    %22 = tpu.matmul %20, %21, %cst_8 {dimension_numbers = #tpu.dot_dimension_numbers<[1], [0], [0], [1], [0, 0, 1, 1], [], []>} : vector<16x128xf32>, vector<128x128xf32>, vector<16x128xf32> -> vector<16x128xf32>
    %c0_9 = arith.constant 0 : index
    %c0_10 = arith.constant 0 : index
    %23 = vector.load %arg3[%c0_9, %c0_10] : memref<1x128xf32, #tpu.memory_space<vmem>>, vector<1x128xf32>
    %24 = vector.broadcast %23 : vector<1x128xf32> to vector<16x128xf32>
    %25 = arith.addf %22, %24 : vector<16x128xf32>
    %cst_11 = arith.constant 0.000000e+00 : f32
    %26 = vector.broadcast %cst_11 : f32 to vector<16x128xf32>
    %27 = arith.maximumf %25, %26 : vector<16x128xf32>
    %c0_12 = arith.constant 0 : index
    %c0_13 = arith.constant 0 : index
    %28 = vector.load %arg4[%c0_12, %c0_13] : memref<128x128xf32, #tpu.memory_space<vmem>>, vector<128x128xf32>
    %cst_14 = arith.constant dense<0.000000e+00> : vector<16x128xf32>
    %29 = tpu.matmul %27, %28, %cst_14 {dimension_numbers = #tpu.dot_dimension_numbers<[1], [0], [0], [1], [0, 0, 1, 1], [], []>} : vector<16x128xf32>, vector<128x128xf32>, vector<16x128xf32> -> vector<16x128xf32>
    %c0_15 = arith.constant 0 : index
    %c0_16 = arith.constant 0 : index
    %30 = vector.load %arg5[%c0_15, %c0_16] : memref<1x128xf32, #tpu.memory_space<vmem>>, vector<1x128xf32>
    %31 = vector.broadcast %30 : vector<1x128xf32> to vector<16x128xf32>
    %32 = arith.addf %29, %31 : vector<16x128xf32>
    %33 = arith.addf %0, %32 : vector<16x128xf32>
    %c0_17 = arith.constant 0 : index
    %c0_18 = arith.constant 0 : index
    %34 = vector.load %arg6[%c0_17, %c0_18] : memref<16x128xf32, #tpu.memory_space<vmem>>, vector<16x128xf32>
    tpu.vector_store %arg6[%c0_17, %c0_18], %33 {strides = array<i32>} : memref<16x128xf32, #tpu.memory_space<vmem>>, vector<16x128xf32>,
    return
  }
  func.func @transform_0(%arg0: i32) -> (i32, i32) {
    %c0_i32 = arith.constant 0 : i32
    %c0_i32_0 = arith.constant 0 : i32
    return %arg0, %c0_i32 : i32, i32
  }
  func.func @transform_1(%arg0: i32) -> (i32, i32) {
    %c0_i32 = arith.constant 0 : i32
    %c0_i32_0 = arith.constant 0 : i32
    %c0_i32_1 = arith.constant 0 : i32
    return %c0_i32, %c0_i32_0 : i32, i32
  }
  func.func @transform_2(%arg0: i32) -> (i32, i32) {
    %c0_i32 = arith.constant 0 : i32
    %c0_i32_0 = arith.constant 0 : i32
    %c0_i32_1 = arith.constant 0 : i32
    return %c0_i32, %c0_i32_0 : i32, i32
  }
  func.func @transform_3(%arg0: i32) -> (i32, i32) {
    %c0_i32 = arith.constant 0 : i32
    %c0_i32_0 = arith.constant 0 : i32
    %c0_i32_1 = arith.constant 0 : i32
    return %c0_i32, %c0_i32_0 : i32, i32
  }
  func.func @transform_4(%arg0: i32) -> (i32, i32) {
    %c0_i32 = arith.constant 0 : i32
    %c0_i32_0 = arith.constant 0 : i32
    %c0_i32_1 = arith.constant 0 : i32
    return %c0_i32, %c0_i32_0 : i32, i32
  }
  func.func @transform_5(%arg0: i32) -> (i32, i32) {
    %c0_i32 = arith.constant 0 : i32
    %c0_i32_0 = arith.constant 0 : i32
    return %arg0, %c0_i32 : i32, i32
  }
}

</mosaic_0001>

<bundles_post_ra>
// kernel: tpu_custom_call.1
= control target key start
LH: loop header
LB: loop body
LE: loop exit
PB: predicated region body
PF: predicated region fallthrough
CT: control target
= control target key end

     0   :  { %10 = vsyncpa [#allocation3], 0  ;;  %s711_s0 = inlined_call_operand.hbm [shape: f32[16,128], index: 0, kind: input, shape index: {}]   ;;  %s712_s1 = inlined_call_operand.hbm [shape: f32[128,128], index: 1, kind: input, shape index: {}]   ;;  %s713_s2 = inlined_call_operand.vmem [shape: f32[1,128], index: 2, kind: input, shape index: {}]   ;;  %s714_s3 = inlined_call_operand.hbm [shape: f32[128,128], index: 3, kind: input, shape index: {}]   ;;  %s715_s4 = inlined_call_operand.vmem [shape: f32[1,128], index: 4, kind: input, shape index: {}]   ;;  %s716_s5 = inlined_call_operand.hbm [shape: f32[16,128], index: 5, kind: output, shape index: {}]  }
   0x1   :  { %11 = vsyncpa [#allocation6], 0 }
   0x2   :  { %12 = vsyncpa [#allocation4], 0  ;;  %s588_s18 = smov [#allocation5]   ;;  %s589_s20 = smov [#allocation2]  }
   0x3   :  { %s30_s19 = sshll.u32 %s588_s18, 4  ;;  %s18_s21 = sshll.u32 %s589_s20, 4  ;;  %s31_s19 = int_to_ptr.vmem [resolvable:$true] %s30_s19  ;;  %s624_s21 = int_to_ptr.vmem [resolvable:$true] %s18_s21 }
   0x4   :  { %s494_s24 = scalar_lea.hbm %s712_s1, 2048 }
   0x5   :  { %p495_p0 = scmp.ne.s32.totalorder %s712_s1, %s494_s24  ;;  %p498_p1 = scmp.lt.u32.totalorder %s494_s24, %s712_s1 }
   0x7   :  { %p500_p2 = pnand %p498_p1, %p495_p0 }
   0x9   :  { %503 = shalt.err (!%p500_p2)
}
   0xa   :  { %s504_s29 = scalar_lea.vmem %s31_s19, 2048  ;;  %p509_p4 = scmp.lt.s32.totalorder %s31_s19, %s31_s19 }
   0xb   :  { %p505_p3 = scmp.ne.s32.totalorder %s31_s19, %s504_s29  ;;  %p510_p5 = scmp.lt.s32.totalorder %s504_s29, %s504_s29 }
   0xd   :  { %p511_p6 = por %p510_p5, %p509_p4 }
   0xf   :  { %p512_p7 = pnand %p511_p6, %p505_p3 }
  0x11   :  { %515 = shalt.err (!%p512_p7)
}
  0x12   :  { %s590_s30 = smov 128   ;;  %s591_s6 = smov 8  }
  0x13   :  { %36 = dma.hbm_to_vmem [thread:$0]  %s712_s1, 2048, %s31_s19, [#allocation6], %s590_s30, %s590_s30, %s591_s6  }
  0x14   :  { %s516_s11 = scalar_lea.hbm %s711_s0, 256 }
  0x15   :  { %p517_p8 = scmp.ne.s32.totalorder %s711_s0, %s516_s11  ;;  %p520_p9 = scmp.lt.u32.totalorder %s516_s11, %s711_s0 }
  0x17   :  { %p522_p10 = pnand %p520_p9, %p517_p8 }
  0x19   :  { %525 = shalt.err (!%p522_p10)
}
  0x1a   :  { %s526_s16 = scalar_lea.vmem %s624_s21, 256  ;;  %p531_p12 = scmp.lt.s32.totalorder %s624_s21, %s624_s21 }
  0x1b   :  { %p527_p11 = scmp.ne.s32.totalorder %s624_s21, %s526_s16  ;;  %p532_p13 = scmp.lt.s32.totalorder %s526_s16, %s526_s16 }
  0x1d   :  { %p533_p0 = por %p532_p13, %p531_p12 }
  0x1f   :  { %p534_p1 = pnand %p533_p0, %p527_p11 }
  0x21   :  { %537 = shalt.err (!%p534_p1)
}
  0x22   :  { %24 = dma.hbm_to_vmem [thread:$0]  %s711_s0, 256, %s624_s21, [#allocation3], %s590_s30, %s590_s30, %s591_s6  }
  0x23   :  { %s592_s18 = smov [#allocation7]   ;;  %s538_s23 = scalar_lea.hbm %s714_s3, 2048 }
  0x24   :  { %s44_s19 = sshll.u32 %s592_s18, 4  ;;  %p539_p2 = scmp.ne.s32.totalorder %s714_s3, %s538_s23  ;;  %s45_s19 = int_to_ptr.vmem [resolvable:$true] %s44_s19 }
  0x25   :  { %p542_p3 = scmp.lt.u32.totalorder %s538_s23, %s714_s3 }
  0x27   :  { %p544_p4 = pnand %p542_p3, %p539_p2 }
  0x29   :  { %547 = shalt.err (!%p544_p4)
}
  0x2a   :  { %s548_s28 = scalar_lea.vmem %s45_s19, 2048  ;;  %p553_p6 = scmp.lt.s32.totalorder %s45_s19, %s45_s19 }
  0x2b   :  { %p549_p5 = scmp.ne.s32.totalorder %s45_s19, %s548_s28  ;;  %p554_p7 = scmp.lt.s32.totalorder %s548_s28, %s548_s28 }
  0x2d   :  { %p555_p8 = por %p554_p7, %p553_p6 }
  0x2f   :  { %p556_p9 = pnand %p555_p8, %p549_p5 }
  0x31   :  { %559 = shalt.err (!%p556_p9)
}
  0x32   :  { %50 = dma.hbm_to_vmem [thread:$0]  %s714_s3, 2048, %s45_s19, [#allocation6], %s590_s30, %s590_s30, %s591_s6  }
  0x33   :  { %582 = dma.done.wait [#allocation3], 256  }
  0x34   :  { %583 = vsyncadd [#allocation3], 4294967040 }
  0x35   :  { %584 = dma.done.wait [#allocation6], 4096  }
  0x36   :  { %585 = vsyncadd [#allocation6], 4294963200  ;;  %v676_v0 = vld [vmem:[#allocation2] sm:$0xff]  ;;  %v678_v1 = vld [vmem:[#allocation2 + $0x8] sm:$0xff]  ;;  %s593_s9 = smov [#allocation8]  }
  0x37   :  { %v92_v2 = vld [vmem:[#allocation5] sm:$0xff]  ;;  %64 = vadd.xlane.f32.xlu0 %v676_v0  ;;  %v70_v3 = vmul.f32 %v676_v0, %v676_v0  ;;  %v93_v4 = vld [vmem:[#allocation5 + $0x8] sm:$0xff]  ;;  %v94_v5 = vld [vmem:[#allocation5 + $0x10] sm:$0xff]  ;;  %v71_v9 = vmul.f32 %v678_v1, %v678_v1  ;;  %s299_s10 = sshll.u32 %s593_s9, 4  ;;  %s300_s10 = int_to_ptr.vmem [resolvable:$true] %s299_s10 }
  0x38   :  { %v95_v6 = vld [vmem:[#allocation5 + $0x18] sm:$0xff]  ;;  %v420_v7 = vpack.c.bf16 %v93_v4, %v92_v2  ;;  %v96_v10 = vld [vmem:[#allocation5 + $0x20] sm:$0xff]  ;;  %v97_v11 = vld [vmem:[#allocation5 + $0x28] sm:$0xff]  ;;  %p565_p11 = scmp.lt.s32.totalorder %s300_s10, %s300_s10 }
  0x39   :  { %v424_v8 = vpack.c.bf16 %v95_v6, %v94_v5  ;;  %72 = vadd.xlane.f32.xlu1 %v70_v3  ;;  %v428_v12 = vpack.c.bf16 %v97_v11, %v96_v10  ;;  %v98_v13 = vld [vmem:[#allocation5 + $0x30] sm:$0xff]  ;;  %v99_v14 = vld [vmem:[#allocation5 + $0x38] sm:$0xff]  ;;  %v100_v16 = vld [vmem:[#allocation5 + $0x40] sm:$0xff] }
  0x3a   :  { %421 = vmatprep.subr.bf16.mxu0 %v420_v7  ;;  %v432_v15 = vpack.c.bf16 %v99_v14, %v98_v13  ;;  %v101_v17 = vld [vmem:[#allocation5 + $0x48] sm:$0xff]  ;;  %v102_v19 = vld [vmem:[#allocation5 + $0x50] sm:$0xff]  ;;  %v103_v20 = vld [vmem:[#allocation5 + $0x58] sm:$0xff] }
  0x3b   :  { %66 = vadd.xlane.f32.xlu0 %v678_v1  ;;  %423 = vmatpush3.bf16.msra.mxu0 %v420_v7  ;;  %v436_v18 = vpack.c.bf16 %v101_v17, %v100_v16  ;;  %v440_v21 = vpack.c.bf16 %v103_v20, %v102_v19  ;;  %v104_v22 = vld [vmem:[#allocation5 + $0x60] sm:$0xff]  ;;  %v105_v23 = vld [vmem:[#allocation5 + $0x68] sm:$0xff]  ;;  %v106_v24 = vld [vmem:[#allocation5 + $0x70] sm:$0xff] }
  0x3c   :  { %425 = vmatprep.subr.bf16.mxu0 %v424_v8  ;;  %v444_v25 = vpack.c.bf16 %v105_v23, %v104_v22  ;;  %v107_v26 = vld [vmem:[#allocation5 + $0x78] sm:$0xff]  ;;  %v192_v28 = vld [vmem:[#allocation7] sm:$0xff]  ;;  %v193_v29 = vld [vmem:[#allocation7 + $0x8] sm:$0xff] }
  0x3d   :  { %74 = vadd.xlane.f32.xlu1 %v71_v9  ;;  %v448_v27 = vpack.c.bf16 %v107_v26, %v106_v24  ;;  %v194_v30 = vld [vmem:[#allocation7 + $0x10] sm:$0xff]  ;;  %v452_v31 = vpack.c.bf16 %v193_v29, %v192_v28  ;;  %v195_v32 = vld [vmem:[#allocation7 + $0x18] sm:$0xff]  ;;  %v196_v34 = vld [vmem:[#allocation7 + $0x20] sm:$0xff] }
  0x3e   :  { %v456_v33 = vpack.c.bf16 %v195_v32, %v194_v30  ;;  %v197_v35 = vld [vmem:[#allocation7 + $0x28] sm:$0xff]  ;;  %v198_v37 = vld [vmem:[#allocation7 + $0x30] sm:$0xff]  ;;  %v199_v38 = vld [vmem:[#allocation7 + $0x38] sm:$0xff] }
  0x3f   :  { %427 = vmatpush3.bf16.msra.mxu0 %v424_v8  ;;  %453 = vmatprep.subr.bf16.mxu1 %v452_v31  ;;  %v460_v36 = vpack.c.bf16 %v197_v35, %v196_v34  ;;  %v464_v39 = vpack.c.bf16 %v199_v38, %v198_v37  ;;  %v200_v40 = vld [vmem:[#allocation7 + $0x40] sm:$0xff]  ;;  %v201_v41 = vld [vmem:[#allocation7 + $0x48] sm:$0xff]  ;;  %v202_v43 = vld [vmem:[#allocation7 + $0x50] sm:$0xff] }
  0x40   :  { %429 = vmatprep.subr.bf16.mxu0 %v428_v12  ;;  %455 = vmatpush3.bf16.msra.mxu1 %v452_v31  ;;  %v468_v42 = vpack.c.bf16 %v201_v41, %v200_v40  ;;  %v203_v44 = vld [vmem:[#allocation7 + $0x58] sm:$0xff]  ;;  %v204_v46 = vld [vmem:[#allocation7 + $0x60] sm:$0xff]  ;;  %v205_v47 = vld [vmem:[#allocation7 + $0x68] sm:$0xff] }
  0x41   :  { %457 = vmatprep.subr.bf16.mxu1 %v456_v33  ;;  %v472_v45 = vpack.c.bf16 %v203_v44, %v202_v43  ;;  %v476_v48 = vpack.c.bf16 %v205_v47, %v204_v46  ;;  %v206_v9 = vld [vmem:[#allocation7 + $0x70] sm:$0xff]  ;;  %v207_v10 = vld [vmem:[#allocation7 + $0x78] sm:$0xff] }
  0x42   :  { %v480_v11 = vpack.c.bf16 %v207_v10, %v206_v9  ;;  %v313_v19 = vld [vmem:[%s715_s4] ss:$0 sm:$0xff] }
  0x43   :  { %431 = vmatpush3.bf16.msra.mxu0 %v428_v12  ;;  %v312_v12 = vld [vmem:[%s713_s2] ss:$0 sm:$0xff]  ;;  %s560_s2 = scalar_lea.vmem %s300_s10, 256 }
  0x44   :  { %433 = vmatprep.subr.bf16.mxu0 %v432_v15  ;;  %459 = vmatpush3.bf16.msra.mxu1 %v456_v33  ;;  %p561_p10 = scmp.ne.s32.totalorder %s300_s10, %s560_s2  ;;  %p566_p12 = scmp.lt.s32.totalorder %s560_s2, %s560_s2 }
  0x45   :  { %461 = vmatprep.subr.bf16.mxu1 %v460_v36 }
  0x46   :  { %p567_p13 = por %p566_p12, %p565_p11 }
  0x47   :  { %435 = vmatpush3.bf16.msra.mxu0 %v432_v15 }
  0x48   :  { %437 = vmatprep.subr.bf16.mxu0 %v436_v18  ;;  %463 = vmatpush3.bf16.msra.mxu1 %v460_v36  ;;  %p568_p0 = pnand %p567_p13, %p561_p10 }
  0x49   :  { %465 = vmatprep.subr.bf16.mxu1 %v464_v39 }
  0x4b   :  { %439 = vmatpush3.bf16.msra.mxu0 %v436_v18 }
  0x4c   :  { %441 = vmatprep.subr.bf16.mxu0 %v440_v21  ;;  %467 = vmatpush3.bf16.msra.mxu1 %v464_v39 }
  0x4d   :  { %469 = vmatprep.subr.bf16.mxu1 %v468_v42 }
  0x4f   :  { %443 = vmatpush3.bf16.msra.mxu0 %v440_v21 }
  0x50   :  { %445 = vmatprep.subr.bf16.mxu0 %v444_v25  ;;  %471 = vmatpush3.bf16.msra.mxu1 %v468_v42 }
  0x51   :  { %473 = vmatprep.subr.bf16.mxu1 %v472_v45 }
  0x53   :  { %447 = vmatpush3.bf16.msra.mxu0 %v444_v25 }
  0x54   :  { %449 = vmatprep.subr.bf16.mxu0 %v448_v27  ;;  %475 = vmatpush3.bf16.msra.mxu1 %v472_v45 }
  0x55   :  { %477 = vmatprep.subr.bf16.mxu1 %v476_v48 }
  0x57   :  { %451 = vmatpush3.bf16.msra.mxu0 %v448_v27 }
  0x58   :  { %479 = vmatpush3.bf16.msra.mxu1 %v476_v48 }
  0x59   :  { %481 = vmatprep.subr.bf16.mxu1 %v480_v11 }
  0x5c   :  { %483 = vmatpush3.bf16.msra.mxu1 %v480_v11 }
  0xc4   :  { %v65_v49 = vpop.xlane.xlu0 %64 }
  0xc5   :  { %v68_v50 = vmul.f32 0.03125, %v65_v49 }
  0xc6   :  { %v73_v51 = vpop.xlane.xlu1 %72 }
  0xc7   :  { %v78_v52 = vmul.f32 %v68_v50, %v68_v50  ;;  %v76_v53 = vmul.f32 0.03125, %v73_v51  ;;  %v84_v3 = vsub.f32 %v676_v0, %v68_v50 }
  0xc8   :  { %v67_v54 = vpop.xlane.xlu0 %66 }
  0xc9   :  { %v80_v55 = vsub.f32 %v76_v53, %v78_v52  ;;  %v69_v56 = vmul.f32 0.03125, %v67_v54 }
  0xca   :  { %v75_v57 = vpop.xlane.xlu1 %74 }
  0xcb   :  { %v82_v58 = vmax.f32 %v80_v55, 0.0  ;;  %v79_v59 = vmul.f32 %v69_v56, %v69_v56  ;;  %v77_v60 = vmul.f32 0.03125, %v75_v57  ;;  %v85_v6 = vsub.f32 %v678_v1, %v69_v56 }
  0xcd   :  { %v86_v61 = vadd.f32 1e-05, %v82_v58  ;;  %v81_v62 = vsub.f32 %v77_v60, %v79_v59 }
  0xcf   :  { %490 = vrsqrt.f32 %v86_v61  ;;  %v83_v63 = vmax.f32 %v81_v62, 0.0 }
  0xd1   :  { %v87_v2 = vadd.f32 1e-05, %v83_v63 }
  0xd3   :  { %492 = vrsqrt.f32 %v87_v2 }
  0xd9   :  { %v491_v4 = vpop.eup %490 }
  0xda   :  { %v90_v5 = vmul.f32 %v491_v4, %v84_v3 }
  0xdc   :  { %382 = vmatprep.mubr.f32.mxu0 %v90_v5 }
  0xdd   :  { %v493_v7 = vpop.eup %492 }
  0xde   :  { %v91_v8 = vmul.f32 %v493_v7, %v85_v6 }
  0xe0   :  { %383 = vmatmul.mubr.f32.vlgmr.msra.gmra.mrb[0].mxu0 %v91_v8 }
 0x1b3   :  { %v384_v13 = vpop.f32.mrb[0].mxu0 }
 0x1b4   :  { %v187_v14 = vadd.f32 %v384_v13, %v312_v12  ;;  %v181_v15 = vpop.f32.mrb[1].mxu0 }
 0x1b5   :  { %v182_v16 = vadd.f32 %v312_v12, %v181_v15 }
 0x1b6   :  { %v191_v18 = vmax.f32 %v187_v14, 0.0 }
 0x1b7   :  { %v190_v17 = vmax.f32 %v182_v16, 0.0 }
 0x1b9   :  { %417 = vmatprep.mubr.f32.mxu1 %v190_v17 }
 0x1ba   :  { %418 = vmatmul.mubr.f32.vlgmr.msra.gmra.mrb[0].mxu1 %v191_v18 }
 0x28d   :  { %v419_v20 = vpop.f32.mrb[0].mxu1 }
 0x28e   :  { %v287_v21 = vadd.f32 %v419_v20, %v313_v19  ;;  %v281_v22 = vpop.f32.mrb[1].mxu1 }
 0x28f   :  { %v282_v23 = vadd.f32 %v313_v19, %v281_v22 }
 0x290   :  { %v291_v24 = vadd.f32 %v287_v21, %v678_v1 }
 0x291   :  { %v290_v25 = vadd.f32 %v282_v23, %v676_v0 }
 0x292   :  { %293 = vst [vmem:[#allocation8 + $0x8] sm:$0xff] %v291_v24 }
 0x293   :  { %292 = vst [vmem:[#allocation8] sm:$0xff] %v290_v25 }
 0x294   :  { %571 = shalt.err (!%p568_p0)
}
 0x295   :  { %s572_s12 = scalar_lea.hbm %s716_s5, 256 }
 0x296   :  { %p573_p1 = scmp.ne.s32.totalorder %s716_s5, %s572_s12  ;;  %p576_p2 = scmp.lt.u32.totalorder %s572_s12, %s716_s5 }
 0x298   :  { %p578_p3 = pnand %p576_p2, %p573_p1 }
 0x29a   :  { %581 = shalt.err (!%p578_p3)
}
 0x29b   :  { %305 = dma.vmem_to_hbm [thread:$0]  %s300_s10, 256, %s716_s5, [#allocation4], %s590_s30, %s590_s30, %s591_s6  }
 0x29c   :  { %586 = dma.done.wait [#allocation4], 256  }
 0x29d   :  { %587 = vsyncadd [#allocation4], 4294967040 }
 0x29e   :  { %309 = vsyncpa [#allocation3], 1 }
 0x29f   :  { %310 = vsyncpa [#allocation6], 1 }
 0x2a0   :  { %311 = vsyncpa [#allocation4], 1 }

// kernel: tpu_custom_call.1
= control target key start
LH: loop header
LB: loop body
LE: loop exit
PB: predicated region body
PF: predicated region fallthrough
CT: control target
= control target key end

     0   :  { %10 = vsyncpa [#allocation3], 0  ;;  %s711_s0 = inlined_call_operand.hbm [shape: f32[16,128], index: 0, kind: input, shape index: {}]   ;;  %s712_s1 = inlined_call_operand.hbm [shape: f32[128,128], index: 1, kind: input, shape index: {}]   ;;  %s713_s2 = inlined_call_operand.vmem [shape: f32[1,128], index: 2, kind: input, shape index: {}]   ;;  %s714_s3 = inlined_call_operand.hbm [shape: f32[128,128], index: 3, kind: input, shape index: {}]   ;;  %s715_s4 = inlined_call_operand.vmem [shape: f32[1,128], index: 4, kind: input, shape index: {}]   ;;  %s716_s5 = inlined_call_operand.hbm [shape: f32[16,128], index: 5, kind: output, shape index: {}]  }
   0x1   :  { %11 = vsyncpa [#allocation6], 0 }
   0x2   :  { %12 = vsyncpa [#allocation4], 0  ;;  %s588_s18 = smov [#allocation5]   ;;  %s589_s20 = smov [#allocation2]  }
   0x3   :  { %s30_s19 = sshll.u32 %s588_s18, 4  ;;  %s18_s21 = sshll.u32 %s589_s20, 4  ;;  %s31_s19 = int_to_ptr.vmem [resolvable:$true] %s30_s19  ;;  %s624_s21 = int_to_ptr.vmem [resolvable:$true] %s18_s21 }
   0x4   :  { %s494_s24 = scalar_lea.hbm %s712_s1, 2048 }
   0x5   :  { %p495_p0 = scmp.ne.s32.totalorder %s712_s1, %s494_s24  ;;  %p498_p1 = scmp.lt.u32.totalorder %s494_s24, %s712_s1 }
   0x7   :  { %p500_p2 = pnand %p498_p1, %p495_p0 }
   0x9   :  { %503 = shalt.err (!%p500_p2)
}
   0xa   :  { %s504_s29 = scalar_lea.vmem %s31_s19, 2048  ;;  %p509_p4 = scmp.lt.s32.totalorder %s31_s19, %s31_s19 }
   0xb   :  { %p505_p3 = scmp.ne.s32.totalorder %s31_s19, %s504_s29  ;;  %p510_p5 = scmp.lt.s32.totalorder %s504_s29, %s504_s29 }
   0xd   :  { %p511_p6 = por %p510_p5, %p509_p4 }
   0xf   :  { %p512_p7 = pnand %p511_p6, %p505_p3 }
  0x11   :  { %515 = shalt.err (!%p512_p7)
}
  0x12   :  { %s590_s30 = smov 128   ;;  %s591_s6 = smov 8  }
  0x13   :  { %36 = dma.hbm_to_vmem [thread:$0]  %s712_s1, 2048, %s31_s19, [#allocation6], %s590_s30, %s590_s30, %s591_s6  }
  0x14   :  { %s516_s11 = scalar_lea.hbm %s711_s0, 256 }
  0x15   :  { %p517_p8 = scmp.ne.s32.totalorder %s711_s0, %s516_s11  ;;  %p520_p9 = scmp.lt.u32.totalorder %s516_s11, %s711_s0 }
  0x17   :  { %p522_p10 = pnand %p520_p9, %p517_p8 }
  0x19   :  { %525 = shalt.err (!%p522_p10)
}
  0x1a   :  { %s526_s16 = scalar_lea.vmem %s624_s21, 256  ;;  %p531_p12 = scmp.lt.s32.totalorder %s624_s21, %s624_s21 }
  0x1b   :  { %p527_p11 = scmp.ne.s32.totalorder %s624_s21, %s526_s16  ;;  %p532_p13 = scmp.lt.s32.totalorder %s526_s16, %s526_s16 }
  0x1d   :  { %p533_p0 = por %p532_p13, %p531_p12 }
  0x1f   :  { %p534_p1 = pnand %p533_p0, %p527_p11 }
  0x21   :  { %537 = shalt.err (!%p534_p1)
}
  0x22   :  { %24 = dma.hbm_to_vmem [thread:$0]  %s711_s0, 256, %s624_s21, [#allocation3], %s590_s30, %s590_s30, %s591_s6  }
  0x23   :  { %s592_s18 = smov [#allocation7]   ;;  %s538_s23 = scalar_lea.hbm %s714_s3, 2048 }
  0x24   :  { %s44_s19 = sshll.u32 %s592_s18, 4  ;;  %p539_p2 = scmp.ne.s32.totalorder %s714_s3, %s538_s23  ;;  %s45_s19 = int_to_ptr.vmem [resolvable:$true] %s44_s19 }
  0x25   :  { %p542_p3 = scmp.lt.u32.totalorder %s538_s23, %s714_s3 }
  0x27   :  { %p544_p4 = pnand %p542_p3, %p539_p2 }
  0x29   :  { %547 = shalt.err (!%p544_p4)
}
  0x2a   :  { %s548_s28 = scalar_lea.vmem %s45_s19, 2048  ;;  %p553_p6 = scmp.lt.s32.totalorder %s45_s19, %s45_s19 }
  0x2b   :  { %p549_p5 = scmp.ne.s32.totalorder %s45_s19, %s548_s28  ;;  %p554_p7 = scmp.lt.s32.totalorder %s548_s28, %s548_s28 }
  0x2d   :  { %p555_p8 = por %p554_p7, %p553_p6 }
  0x2f   :  { %p556_p9 = pnand %p555_p8, %p549_p5 }
  0x31   :  { %559 = shalt.err (!%p556_p9)
}
  0x32   :  { %50 = dma.hbm_to_vmem [thread:$0]  %s714_s3, 2048, %s45_s19, [#allocation6], %s590_s30, %s590_s30, %s591_s6  }
  0x33   :  { %582 = dma.done.wait [#allocation3], 256  }
  0x34   :  { %583 = vsyncadd [#allocation3], 4294967040 }
  0x35   :  { %584 = dma.done.wait [#allocation6], 4096  }
  0x36   :  { %585 = vsyncadd [#allocation6], 4294963200  ;;  %v676_v0 = vld [vmem:[#allocation2] sm:$0xff]  ;;  %v678_v1 = vld [vmem:[#allocation2 + $0x8] sm:$0xff]  ;;  %s593_s9 = smov [#allocation8]  }
  0x37   :  { %v92_v2 = vld [vmem:[#allocation5] sm:$0xff]  ;;  %64 = vadd.xlane.f32.xlu0 %v676_v0  ;;  %v70_v3 = vmul.f32 %v676_v0, %v676_v0  ;;  %v93_v4 = vld [vmem:[#allocation5 + $0x8] sm:$0xff]  ;;  %v94_v5 = vld [vmem:[#allocation5 + $0x10] sm:$0xff]  ;;  %v71_v9 = vmul.f32 %v678_v1, %v678_v1  ;;  %s299_s10 = sshll.u32 %s593_s9, 4  ;;  %s300_s10 = int_to_ptr.vmem [resolvable:$true] %s299_s10 }
  0x38   :  { %v95_v6 = vld [vmem:[#allocation5 + $0x18] sm:$0xff]  ;;  %v420_v7 = vpack.c.bf16 %v93_v4, %v92_v2  ;;  %v96_v10 = vld [vmem:[#allocation5 + $0x20] sm:$0xff]  ;;  %v97_v11 = vld [vmem:[#allocation5 + $0x28] sm:$0xff]  ;;  %p565_p11 = scmp.lt.s32.totalorder %s300_s10, %s300_s10 }
  0x39   :  { %v424_v8 = vpack.c.bf16 %v95_v6, %v94_v5  ;;  %72 = vadd.xlane.f32.xlu1 %v70_v3  ;;  %v428_v12 = vpack.c.bf16 %v97_v11, %v96_v10  ;;  %v98_v13 = vld [vmem:[#allocation5 + $0x30] sm:$0xff]  ;;  %v99_v14 = vld [vmem:[#allocation5 + $0x38] sm:$0xff]  ;;  %v100_v16 = vld [vmem:[#allocation5 + $0x40] sm:$0xff] }
  0x3a   :  { %421 = vmatprep.subr.bf16.mxu0 %v420_v7  ;;  %v432_v15 = vpack.c.bf16 %v99_v14, %v98_v13  ;;  %v101_v17 = vld [vmem:[#allocation5 + $0x48] sm:$0xff]  ;;  %v102_v19 = vld [vmem:[#allocation5 + $0x50] sm:$0xff]  ;;  %v103_v20 = vld [vmem:[#allocation5 + $0x58] sm:$0xff] }
  0x3b   :  { %66 = vadd.xlane.f32.xlu0 %v678_v1  ;;  %423 = vmatpush3.bf16.msra.mxu0 %v420_v7  ;;  %v436_v18 = vpack.c.bf16 %v101_v17, %v100_v16  ;;  %v440_v21 = vpack.c.bf16 %v103_v20, %v102_v19  ;;  %v104_v22 = vld [vmem:[#allocation5 + $0x60] sm:$0xff]  ;;  %v105_v23 = vld [vmem:[#allocation5 + $0x68] sm:$0xff]  ;;  %v106_v24 = vld [vmem:[#allocation5 + $0x70] sm:$0xff] }
  0x3c   :  { %425 = vmatprep.subr.bf16.mxu0 %v424_v8  ;;  %v444_v25 = vpack.c.bf16 %v105_v23, %v104_v22  ;;  %v107_v26 = vld [vmem:[#allocation5 + $0x78] sm:$0xff]  ;;  %v192_v28 = vld [vmem:[#allocation7] sm:$0xff]  ;;  %v193_v29 = vld [vmem:[#allocation7 + $0x8] sm:$0xff] }
  0x3d   :  { %74 = vadd.xlane.f32.xlu1 %v71_v9  ;;  %v448_v27 = vpack.c.bf16 %v107_v26, %v106_v24  ;;  %v194_v30 = vld [vmem:[#allocation7 + $0x10] sm:$0xff]  ;;  %v452_v31 = vpack.c.bf16 %v193_v29, %v192_v28  ;;  %v195_v32 = vld [vmem:[#allocation7 + $0x18] sm:$0xff]  ;;  %v196_v34 = vld [vmem:[#allocation7 + $0x20] sm:$0xff] }
  0x3e   :  { %v456_v33 = vpack.c.bf16 %v195_v32, %v194_v30  ;;  %v197_v35 = vld [vmem:[#allocation7 + $0x28] sm:$0xff]  ;;  %v198_v37 = vld [vmem:[#allocation7 + $0x30] sm:$0xff]  ;;  %v199_v38 = vld [vmem:[#allocation7 + $0x38] sm:$0xff] }
  0x3f   :  { %427 = vmatpush3.bf16.msra.mxu0 %v424_v8  ;;  %453 = vmatprep.subr.bf16.mxu1 %v452_v31  ;;  %v460_v36 = vpack.c.bf16 %v197_v35, %v196_v34  ;;  %v464_v39 = vpack.c.bf16 %v199_v38, %v198_v37  ;;  %v200_v40 = vld [vmem:[#allocation7 + $0x40] sm:$0xff]  ;;  %v201_v41 = vld [vmem:[#allocation7 + $0x48] sm:$0xff]  ;;  %v202_v43 = vld [vmem:[#allocation7 + $0x50] sm:$0xff] }
  0x40   :  { %429 = vmatprep.subr.bf16.mxu0 %v428_v12  ;;  %455 = vmatpush3.bf16.msra.mxu1 %v452_v31  ;;  %v468_v42 = vpack.c.bf16 %v201_v41, %v200_v40  ;;  %v203_v44 = vld [vmem:[#allocation7 + $0x58] sm:$0xff]  ;;  %v204_v46 = vld [vmem:[#allocation7 + $0x60] sm:$0xff]  ;;  %v205_v47 = vld [vmem:[#allocation7 + $0x68] sm:$0xff] }
  0x41   :  { %457 = vmatprep.subr.bf16.mxu1 %v456_v33  ;;  %v472_v45 = vpack.c.bf16 %v203_v44, %v202_v43  ;;  %v476_v48 = vpack.c.bf16 %v205_v47, %v204_v46  ;;  %v206_v9 = vld [vmem:[#allocation7 + $0x70] sm:$0xff]  ;;  %v207_v10 = vld [vmem:[#allocation7 + $0x78] sm:$0xff] }
  0x42   :  { %v480_v11 = vpack.c.bf16 %v207_v10, %v206_v9  ;;  %v313_v19 = vld [vmem:[%s715_s4] ss:$0 sm:$0xff] }
  0x43   :  { %431 = vmatpush3.bf16.msra.mxu0 %v428_v12  ;;  %v312_v12 = vld [vmem:[%s713_s2] ss:$0 sm:$0xff]  ;;  %s560_s2 = scalar_lea.vmem %s300_s10, 256 }
  0x44   :  { %433 = vmatprep.subr.bf16.mxu0 %v432_v15  ;;  %459 = vmatpush3.bf16.msra.mxu1 %v456_v33  ;;  %p561_p10 = scmp.ne.s32.totalorder %s300_s10, %s560_s2  ;;  %p566_p12 = scmp.lt.s32.totalorder %s560_s2, %s560_s2 }
  0x45   :  { %461 = vmatprep.subr.bf16.mxu1 %v460_v36 }
  0x46   :  { %p567_p13 = por %p566_p12, %p565_p11 }
  0x47   :  { %435 = vmatpush3.bf16.msra.mxu0 %v432_v15 }
  0x48   :  { %437 = vmatprep.subr.bf16.mxu0 %v436_v18  ;;  %463 = vmatpush3.bf16.msra.mxu1 %v460_v36  ;;  %p568_p0 = pnand %p567_p13, %p561_p10 }
  0x49   :  { %465 = vmatprep.subr.bf16.mxu1 %v464_v39 }
  0x4b   :  { %439 = vmatpush3.bf16.msra.mxu0 %v436_v18 }
  0x4c   :  { %441 = vmatprep.subr.bf16.mxu0 %v440_v21  ;;  %467 = vmatpush3.bf16.msra.mxu1 %v464_v39 }
  0x4d   :  { %469 = vmatprep.subr.bf16.mxu1 %v468_v42 }
  0x4f   :  { %443 = vmatpush3.bf16.msra.mxu0 %v440_v21 }
  0x50   :  { %445 = vmatprep.subr.bf16.mxu0 %v444_v25  ;;  %471 = vmatpush3.bf16.msra.mxu1 %v468_v42 }
  0x51   :  { %473 = vmatprep.subr.bf16.mxu1 %v472_v45 }
  0x53   :  { %447 = vmatpush3.bf16.msra.mxu0 %v444_v25 }
  0x54   :  { %449 = vmatprep.subr.bf16.mxu0 %v448_v27  ;;  %475 = vmatpush3.bf16.msra.mxu1 %v472_v45 }
  0x55   :  { %477 = vmatprep.subr.bf16.mxu1 %v476_v48 }
  0x57   :  { %451 = vmatpush3.bf16.msra.mxu0 %v448_v27 }
  0x58   :  { %479 = vmatpush3.bf16.msra.mxu1 %v476_v48 }
  0x59   :  { %481 = vmatprep.subr.bf16.mxu1 %v480_v11 }
  0x5c   :  { %483 = vmatpush3.bf16.msra.mxu1 %v480_v11 }
  0xc4   :  { %v65_v49 = vpop.xlane.xlu0 %64 }
  0xc5   :  { %v68_v50 = vmul.f32 0.03125, %v65_v49 }
  0xc6   :  { %v73_v51 = vpop.xlane.xlu1 %72 }
  0xc7   :  { %v78_v52 = vmul.f32 %v68_v50, %v68_v50  ;;  %v76_v53 = vmul.f32 0.03125, %v73_v51  ;;  %v84_v3 = vsub.f32 %v676_v0, %v68_v50 }
  0xc8   :  { %v67_v54 = vpop.xlane.xlu0 %66 }
  0xc9   :  { %v80_v55 = vsub.f32 %v76_v53, %v78_v52  ;;  %v69_v56 = vmul.f32 0.03125, %v67_v54 }
  0xca   :  { %v75_v57 = vpop.xlane.xlu1 %74 }
  0xcb   :  { %v82_v58 = vmax.f32 %v80_v55, 0.0  ;;  %v79_v59 = vmul.f32 %v69_v56, %v69_v56  ;;  %v77_v60 = vmul.f32 0.03125, %v75_v57  ;;  %v85_v6 = vsub.f32 %v678_v1, %v69_v56 }
  0xcd   :  { %v86_v61 = vadd.f32 1e-05, %v82_v58  ;;  %v81_v62 = vsub.f32 %v77_v60, %v79_v59 }
  0xcf   :  { %490 = vrsqrt.f32 %v86_v61  ;;  %v83_v63 = vmax.f32 %v81_v62, 0.0 }
  0xd1   :  { %v87_v2 = vadd.f32 1e-05, %v83_v63 }
  0xd3   :  { %492 = vrsqrt.f32 %v87_v2 }
  0xd9   :  { %v491_v4 = vpop.eup %490 }
  0xda   :  { %v90_v5 = vmul.f32 %v491_v4, %v84_v3 }
  0xdc   :  { %382 = vmatprep.mubr.f32.mxu0 %v90_v5 }
  0xdd   :  { %v493_v7 = vpop.eup %492 }
  0xde   :  { %v91_v8 = vmul.f32 %v493_v7, %v85_v6 }
  0xe0   :  { %383 = vmatmul.mubr.f32.vlgmr.msra.gmra.mrb[0].mxu0 %v91_v8 }
 0x1b3   :  { %v384_v13 = vpop.f32.mrb[0].mxu0 }
 0x1b4   :  { %v187_v14 = vadd.f32 %v384_v13, %v312_v12  ;;  %v181_v15 = vpop.f32.mrb[1].mxu0 }
 0x1b5   :  { %v182_v16 = vadd.f32 %v312_v12, %v181_v15 }
 0x1b6   :  { %v191_v18 = vmax.f32 %v187_v14, 0.0 }
 0x1b7   :  { %v190_v17 = vmax.f32 %v182_v16, 0.0 }
 0x1b9   :  { %417 = vmatprep.mubr.f32.mxu1 %v190_v17 }
 0x1ba   :  { %418 = vmatmul.mubr.f32.vlgmr.msra.gmra.mrb[0].mxu1 %v191_v18 }
 0x28d   :  { %v419_v20 = vpop.f32.mrb[0].mxu1 }
 0x28e   :  { %v287_v21 = vadd.f32 %v419_v20, %v313_v19  ;;  %v281_v22 = vpop.f32.mrb[1].mxu1 }
 0x28f   :  { %v282_v23 = vadd.f32 %v313_v19, %v281_v22 }
 0x290   :  { %v291_v24 = vadd.f32 %v287_v21, %v678_v1 }
 0x291   :  { %v290_v25 = vadd.f32 %v282_v23, %v676_v0 }
 0x292   :  { %293 = vst [vmem:[#allocation8 + $0x8] sm:$0xff] %v291_v24 }
 0x293   :  { %292 = vst [vmem:[#allocation8] sm:$0xff] %v290_v25 }
 0x294   :  { %571 = shalt.err (!%p568_p0)
}
 0x295   :  { %s572_s12 = scalar_lea.hbm %s716_s5, 256 }
 0x296   :  { %p573_p1 = scmp.ne.s32.totalorder %s716_s5, %s572_s12  ;;  %p576_p2 = scmp.lt.u32.totalorder %s572_s12, %s716_s5 }
 0x298   :  { %p578_p3 = pnand %p576_p2, %p573_p1 }
 0x29a   :  { %581 = shalt.err (!%p578_p3)
}
 0x29b   :  { %305 = dma.vmem_to_hbm [thread:$0]  %s300_s10, 256, %s716_s5, [#allocation4], %s590_s30, %s590_s30, %s591_s6  }
 0x29c   :  { %586 = dma.done.wait [#allocation4], 256  }
 0x29d   :  { %587 = vsyncadd [#allocation4], 4294967040 }
 0x29e   :  { %309 = vsyncpa [#allocation3], 1 }
 0x29f   :  { %310 = vsyncpa [#allocation6], 1 }
 0x2a0   :  { %311 = vsyncpa [#allocation4], 1 }

</bundles_post_ra>
